<compile_context>
chip_gen: v6e
topology: v6e:2x2x1
jax: 0.10.0
libtpu: 0.0.40
codegen_flags: <defaults>
</compile_context>

<pallas_src>
import jax
import jax.numpy as jnp
import numpy as np
from jax.experimental import pallas as pl
from jax.experimental.pallas import tpu as pltpu


# ----------------------------- irreps setup ---------------------------------

HIDDEN_IRREPS = [(32, 1), (32, 3), (32, 5)]   # (mul, ir_dim) for 0e, 1o, 2e
OUT_IRREPS    = [(1, 1), (1, 3), (1, 5)]      # '1x0e + 1x1o + 1x2e'

IN_DIM  = sum(m * d for m, d in HIDDEN_IRREPS)   # 288
OUT_DIM = sum(m * d for m, d in OUT_IRREPS)      # 9


def build_readout_weight(key):
    """Dense [IN_DIM, OUT_DIM] matrix equivalent to the e3nn Linear.

    Per-path weights w ~ N(0, 1) of shape (mul_in, mul_out), scaled by
    path_weight = 1/sqrt(mul_in * num_paths). Each output irrep has exactly one
    matching input irrep here, so num_paths = 1.
    """
    in_off = 0
    out_off = 0
    W = jnp.zeros((IN_DIM, OUT_DIM), dtype=jnp.float32)
    keys = jax.random.split(key, len(HIDDEN_IRREPS))
    for k, ((mul_in, d_in), (mul_out, d_out)) in zip(keys, zip(HIDDEN_IRREPS, OUT_IRREPS)):
        assert d_in == d_out
        d = d_in
        w = jax.random.normal(k, (mul_in, mul_out), dtype=jnp.float32)
        path_weight = 1.0 / np.sqrt(mul_in * 1)          # e3nn "element" normalization
        # W_seg[m*d + c, o*d + c] = pw * w[m, o]  == pw * kron(w, eye(d))
        w_seg = path_weight * jnp.kron(w, jnp.eye(d, dtype=jnp.float32))
        W = W.at[in_off:in_off + mul_in * d, out_off:out_off + mul_out * d].set(w_seg)
        in_off += mul_in * d
        out_off += mul_out * d
    return W


# ----------------------------- Pallas kernel --------------------------------

def readout_kernel(x_ref, w_ref, o_ref):
    # x_ref: (TM, IN_DIM)   VMEM tile of node features (streamed at input dtype)
    # w_ref: (IN_DIM, OUT_DIM) full weight, resident across grid steps
    # o_ref: (TM, OUT_DIM)  narrow f32 output tile (9 real columns only)
    o_ref[...] = jnp.dot(
        x_ref[...], w_ref[...], preferred_element_type=jnp.float32
    ).astype(o_ref.dtype)


def _round_up(x, m):
    return ((x + m - 1) // m) * m


def _choose_row_tile(n_nodes, tm):
    """Row tile: multiple of 8, clamped to the node count; for large N also capped
    so the grid has >= ~8 steps (megacore balance on v7x + pipeline overlap), with
    a 512-row floor so each step still amortizes the ~0.35 us per-step overhead."""
    tm = max(8, _round_up(int(tm), 8))
    n_pad = _round_up(max(int(n_nodes), 1), 8)
    tm_eff = min(tm, n_pad)
    min_steps, min_rows = 8, 512
    if n_pad >= min_steps * min_rows:
        balanced = _round_up(-(-n_pad // min_steps), 128)   # ceil(N/8) rounded to 128
        tm_eff = min(tm_eff, max(min_rows, balanced))
    return max(8, _round_up(tm_eff, 8))


def _vmem_cap_bytes():
    """Generation-aware VMEM ceiling (~70% of physical; v7x has only 64 MiB/TC)."""
    try:
        cap = pltpu.get_tpu_info().vmem_capacity_bytes
    except Exception:
        cap = 64 * 1024 * 1024   # conservative default (v7x per-TC VMEM)
    return int(0.70 * cap)


def readout_l2(node_features, W, *, tm=4096, compute_dtype=None):
    """out = node_features @ W, via a Pallas TPU kernel.

    node_features: [N, 288]  (f32 or bf16 — streamed as-is, no wrapper-side cast)
    W:             [288, 9]  f32 (dense equivalent of the e3nn Linear)
    compute_dtype: only pass this (e.g. jnp.bfloat16) if the cast fuses into the
                   producer; otherwise a standalone convert costs more HBM traffic
                   than the narrower read saves.
    returns        [N, 9]    f32
    """
    n_nodes, in_dim = node_features.shape
    assert in_dim == IN_DIM
    assert W.shape == (IN_DIM, OUT_DIM)

    x = node_features
    if compute_dtype is not None and x.dtype != jnp.dtype(compute_dtype):
        x = x.astype(compute_dtype)
    w = W.astype(x.dtype)
    x_bytes = jnp.dtype(x.dtype).itemsize

    tm_eff = _choose_row_tile(n_nodes, tm)
    grid = (pl.cdiv(n_nodes, tm_eff),)

    # VMEM accounting with lane padding: feature axis 288 -> 384 lanes, output
    # axis 9 -> 128 lanes. x/out tiles are double-buffered; W is single-buffered.
    in_lanes = _round_up(IN_DIM, 128)     # 384
    out_lanes = _round_up(OUT_DIM, 128)   # 128
    vmem_need = (2 * tm_eff * in_lanes * x_bytes
                 + 2 * tm_eff * out_lanes * 4
                 + _round_up(IN_DIM, 8) * out_lanes * x_bytes)

    compiler_kwargs = dict(dimension_semantics=("parallel",))
    if vmem_need > 16 * 1024 * 1024:      # above v5e's scoped default -> raise explicitly
        compiler_kwargs["vmem_limit_bytes"] = min(
            int(vmem_need * 1.25) + (1 << 20), _vmem_cap_bytes())

    cost = pl.CostEstimate(
        flops=2 * n_nodes * IN_DIM * OUT_DIM,
        transcendentals=0,
        bytes_accessed=(n_nodes * IN_DIM * x_bytes       # read x
                        + n_nodes * OUT_DIM * 4          # write narrow f32 out
                        + IN_DIM * OUT_DIM * x_bytes),   # read W once
    )

    # W has a constant index_map -> single-buffer it (saves a VMEM buffer + a DMA).
    try:
        w_spec = pl.BlockSpec((IN_DIM, OUT_DIM), lambda i: (0, 0),
                              pipeline_mode=pl.Buffered(1))
    except TypeError:   # older BlockSpec signature without pipeline_mode
        w_spec = pl.BlockSpec((IN_DIM, OUT_DIM), lambda i: (0, 0))

    out = pl.pallas_call(
        readout_kernel,
        out_shape=jax.ShapeDtypeStruct((n_nodes, OUT_DIM), jnp.float32),
        grid_spec=pltpu.PrefetchScalarGridSpec(
            num_scalar_prefetch=0,
            grid=grid,
            in_specs=[
                # node-feature row tile; full (un-tiled) feature axis
                pl.BlockSpec((tm_eff, IN_DIM), lambda i: (i, 0)),
                # whole weight matrix, constant block -> resident every step
                w_spec,
            ],
            out_specs=pl.BlockSpec((tm_eff, OUT_DIM), lambda i: (i, 0)),
        ),
        compiler_params=pltpu.CompilerParams(**compiler_kwargs),
        cost_estimate=cost,
    )(x, w)

    return out


# ----------------------------- reference & main ------------------------------

def readout_l2_reference_np(node_features, W):
    return np.asarray(node_features, np.float32) @ np.asarray(W, np.float32)


if __name__ == "__main__":
    key = jax.random.PRNGKey(0)
    k_w, k_x = jax.random.split(key)

    # Small synthetic node count, deliberately NOT a multiple of 8 or of the tile
    # so the cdiv / partial-block path is exercised.
    n_nodes = 300
    W = build_readout_weight(k_w)
    x_f32 = jax.random.normal(k_x, (n_nodes, IN_DIM), dtype=jnp.float32)

    ref_f32 = readout_l2_reference_np(x_f32, W)

    # 1) Default: stream f32 (no wrapper cast), tile clamped to N -> single grid step.
    out = jax.block_until_ready(readout_l2(x_f32, W))
    assert out.shape == (n_nodes, OUT_DIM)
    np.testing.assert_allclose(np.asarray(out), ref_f32, rtol=2e-3, atol=2e-3)

    # 2) Small tile -> multi-step grid with a ragged last block.
    out_tiled = jax.block_until_ready(readout_l2(x_f32, W, tm=128))
    np.testing.assert_allclose(np.asarray(out_tiled), ref_f32, rtol=2e-3, atol=2e-3)

    # 3) bf16 node features arriving from "upstream" -> streamed as bf16, f32 MXU accumulation.
    x_bf16 = x_f32.astype(jnp.bfloat16)
    ref_bf16 = (np.asarray(x_bf16, np.float32)
                @ np.asarray(W.astype(jnp.bfloat16), np.float32))
    out_bf16 = jax.block_until_ready(readout_l2(x_bf16, W, tm=128))
    np.testing.assert_allclose(np.asarray(out_bf16), ref_bf16, rtol=2e-3, atol=2e-3)
    np.testing.assert_allclose(np.asarray(out_bf16), ref_f32, rtol=5e-2, atol=5e-2)

    print("KERNEL_OK")
</pallas_src>

<mosaic_0001>
module attributes {stable_mosaic.version = 11 : i64} {
  func.func @readout_kernel(%arg0: i32, %arg1: memref<304x288xf32, #tpu.memory_space<vmem>>, %arg2: memref<288x9xf32, #tpu.memory_space<vmem>>, %arg3: memref<304x9xf32, #tpu.memory_space<vmem>>) attributes {dimension_semantics = [#tpu.dimension_semantics<parallel>], iteration_bounds = array<i64: 1>, scalar_prefetch = 0 : i64, scratch_operands = 0 : i64, tpu.core_type = #tpu.core_type<tc>, window_params = [{transform_indices = @transform_0, window_bounds = array<i64: 304, 288>}, {pipeline_mode = #tpu.pipeline_mode<synchronous>, transform_indices = @transform_1, window_bounds = array<i64: 288, 9>}, {transform_indices = @transform_2, window_bounds = array<i64: 304, 9>}]} {
    %c0 = arith.constant 0 : index
    %c0_0 = arith.constant 0 : index
    %0 = vector.load %arg1[%c0, %c0_0] : memref<304x288xf32, #tpu.memory_space<vmem>>, vector<304x288xf32>
    %c0_1 = arith.constant 0 : index
    %c0_2 = arith.constant 0 : index
    %1 = vector.load %arg2[%c0_1, %c0_2] : memref<288x9xf32, #tpu.memory_space<vmem>>, vector<288x9xf32>
    %cst = arith.constant dense<0.000000e+00> : vector<304x9xf32>
    %2 = tpu.matmul %0, %1, %cst {dimension_numbers = #tpu.dot_dimension_numbers<[1], [0], [0], [1], [0, 0, 1, 1], [], []>} : vector<304x288xf32>, vector<288x9xf32>, vector<304x9xf32> -> vector<304x9xf32>
    %c0_3 = arith.constant 0 : index
    %c0_4 = arith.constant 0 : index
    %3 = vector.load %arg3[%c0_3, %c0_4] : memref<304x9xf32, #tpu.memory_space<vmem>>, vector<304x9xf32>
    tpu.vector_store %arg3[%c0_3, %c0_4], %2 {strides = array<i32>} : memref<304x9xf32, #tpu.memory_space<vmem>>, vector<304x9xf32>,
    return
  }
  func.func @transform_0(%arg0: i32) -> (i32, i32) {
    %c0_i32 = arith.constant 0 : i32
    %c0_i32_0 = arith.constant 0 : i32
    return %arg0, %c0_i32 : i32, i32
  }
  func.func @transform_1(%arg0: i32) -> (i32, i32) {
    %c0_i32 = arith.constant 0 : i32
    %c0_i32_0 = arith.constant 0 : i32
    %c0_i32_1 = arith.constant 0 : i32
    return %c0_i32, %c0_i32_0 : i32, i32
  }
  func.func @transform_2(%arg0: i32) -> (i32, i32) {
    %c0_i32 = arith.constant 0 : i32
    %c0_i32_0 = arith.constant 0 : i32
    return %arg0, %c0_i32 : i32, i32
  }
}

</mosaic_0001>

<bundles_post_ra>
// kernel: tpu_custom_call.1
= control target key start
LH: loop header
LB: loop body
LE: loop exit
PB: predicated region body
PF: predicated region fallthrough
CT: control target
= control target key end

     0   :  { %v1039_v0 = vmov 0.0   ;;  %vm161_vm0 = vcmask 261120   ;;  %vm786_vm1 = vcmask 72704   ;;  %s1786_s1 = inlined_call_operand.vmem [shape: f32[288,9], index: 1, kind: input, shape index: {}]   ;;  %s1787_s0 = inlined_call_operand.vmem [shape: f32[300,288], index: 0, kind: input, shape index: {}]   ;;  %s1788_s2 = inlined_call_operand.vmem [shape: f32[300,9], index: 2, kind: output, shape index: {}]  }
   0x1   :  { %276 = vmatprep.subr.mxu0 %v1039_v0  ;;  %974 = vmatprep.subr.mxu1 %v1039_v0  ;;  %v140_v1 = vld [vmem:[%s1786_s1 + $0x78] sm:$0xff]  ;;  %v139_v2 = vld [vmem:[%s1786_s1 + $0x70] sm:$0xff]  ;;  %v138_v3 = vld [vmem:[%s1786_s1 + $0x68] sm:$0xff] }
   0x2   :  { %277 = vmatpush1.msra.mxu0 %v140_v1  ;;  %1006 = vmatpush1.msra.mxu1 %v140_v1  ;;  %v137_v4 = vld [vmem:[%s1786_s1 + $0x60] sm:$0xff]  ;;  %v136_v5 = vld [vmem:[%s1786_s1 + $0x58] sm:$0xff]  ;;  %v135_v6 = vld [vmem:[%s1786_s1 + $0x50] sm:$0xff] }
   0x3   :  { %278 = vmatprep.subr.mxu0 %v1039_v0  ;;  %975 = vmatprep.subr.mxu1 %v1039_v0  ;;  %v134_v7 = vld [vmem:[%s1786_s1 + $0x48] sm:$0xff]  ;;  %v133_v8 = vld [vmem:[%s1786_s1 + $0x40] sm:$0xff]  ;;  %v132_v9 = vld [vmem:[%s1786_s1 + $0x38] sm:$0xff] }
   0x4   :  { %279 = vmatpush1.msra.mxu0 %v139_v2  ;;  %1007 = vmatpush1.msra.mxu1 %v139_v2  ;;  %v131_v10 = vld [vmem:[%s1786_s1 + $0x30] sm:$0xff]  ;;  %v130_v11 = vld [vmem:[%s1786_s1 + $0x28] sm:$0xff]  ;;  %v129_v12 = vld [vmem:[%s1786_s1 + $0x20] sm:$0xff] }
   0x5   :  { %280 = vmatprep.subr.mxu0 %v1039_v0  ;;  %976 = vmatprep.subr.mxu1 %v1039_v0  ;;  %v128_v13 = vld [vmem:[%s1786_s1 + $0x18] sm:$0xff]  ;;  %v127_v14 = vld [vmem:[%s1786_s1 + $0x10] sm:$0xff]  ;;  %v126_v15 = vld [vmem:[%s1786_s1 + $0x8] sm:$0xff] }
   0x6   :  { %281 = vmatpush1.msra.mxu0 %v138_v3  ;;  %1008 = vmatpush1.msra.mxu1 %v138_v3  ;;  %v125_v16 = vld [vmem:[%s1786_s1] sm:$0xff]  ;;  %v156_v17 = vld [vmem:[%s1786_s1 + $0xf8] sm:$0xff]  ;;  %v155_v18 = vld [vmem:[%s1786_s1 + $0xf0] sm:$0xff] }
   0x7   :  { %282 = vmatprep.subr.mxu0 %v1039_v0  ;;  %977 = vmatprep.subr.mxu1 %v1039_v0  ;;  %v154_v19 = vld [vmem:[%s1786_s1 + $0xe8] sm:$0xff]  ;;  %v153_v20 = vld [vmem:[%s1786_s1 + $0xe0] sm:$0xff]  ;;  %v152_v21 = vld [vmem:[%s1786_s1 + $0xd8] sm:$0xff] }
   0x8   :  { %283 = vmatpush1.msra.mxu0 %v137_v4  ;;  %1009 = vmatpush1.msra.mxu1 %v137_v4  ;;  %v151_v22 = vld [vmem:[%s1786_s1 + $0xd0] sm:$0xff]  ;;  %v150_v23 = vld [vmem:[%s1786_s1 + $0xc8] sm:$0xff]  ;;  %v149_v24 = vld [vmem:[%s1786_s1 + $0xc0] sm:$0xff] }
   0x9   :  { %284 = vmatprep.subr.mxu0 %v1039_v0  ;;  %978 = vmatprep.subr.mxu1 %v1039_v0  ;;  %v148_v25 = vld [vmem:[%s1786_s1 + $0xb8] sm:$0xff]  ;;  %v147_v26 = vld [vmem:[%s1786_s1 + $0xb0] sm:$0xff]  ;;  %v146_v27 = vld [vmem:[%s1786_s1 + $0xa8] sm:$0xff] }
   0xa   :  { %285 = vmatpush1.msra.mxu0 %v136_v5  ;;  %1010 = vmatpush1.msra.mxu1 %v136_v5  ;;  %v145_v28 = vld [vmem:[%s1786_s1 + $0xa0] sm:$0xff]  ;;  %v144_v29 = vld [vmem:[%s1786_s1 + $0x98] sm:$0xff]  ;;  %v143_v30 = vld [vmem:[%s1786_s1 + $0x90] sm:$0xff] }
   0xb   :  { %286 = vmatprep.subr.mxu0 %v1039_v0  ;;  %979 = vmatprep.subr.mxu1 %v1039_v0  ;;  %v142_v31 = vld [vmem:[%s1786_s1 + $0x88] sm:$0xff]  ;;  %v141_v32 = vld [vmem:[%s1786_s1 + $0x80] sm:$0xff]  ;;  %v98_v36 = vld [vmem:[%s1787_s0 + $0x2b8] sm:$0xff] }
   0xc   :  { %287 = vmatpush1.msra.mxu0 %v135_v6  ;;  %1011 = vmatpush1.msra.mxu1 %v135_v6  ;;  %v12_v33 = vld [vmem:[%s1787_s0 + $0x8] sm:$0xff]  ;;  %v99_v34 = vld [vmem:[%s1787_s0 + $0x2c0] sm:$0xff]  ;;  %v160_v37 = vld [vmem:[%s1786_s1 + $0x118] sm:$0xff] }
   0xd   :  { %288 = vmatprep.subr.mxu0 %v1039_v0  ;;  %980 = vmatprep.subr.mxu1 %v1039_v0  ;;  %v11_v35 = vld [vmem:[%s1787_s0] sm:$0xff]  ;;  %v102_v39 = vld [vmem:[%s1787_s0 + $0x2d8] sm:$0xff]  ;;  %v159_v40 = vld [vmem:[%s1786_s1 + $0x110] sm:$0xff] }
   0xe   :  { %289 = vmatpush1.msra.mxu0 %v134_v7  ;;  %1012 = vmatpush1.msra.mxu1 %v134_v7  ;;  %v15_v38 = vld [vmem:[%s1787_s0 + $0x20] sm:$0xff]  ;;  %v14_v41 = vld [vmem:[%s1787_s0 + $0x18] sm:$0xff]  ;;  %v101_v42 = vld [vmem:[%s1787_s0 + $0x2d0] sm:$0xff] }
   0xf   :  { %290 = vmatprep.subr.mxu0 %v1039_v0  ;;  %981 = vmatprep.subr.mxu1 %v1039_v0  ;;  %v18_v43 = vld [vmem:[%s1787_s0 + $0x38] sm:$0xff]  ;;  %v105_v44 = vld [vmem:[%s1787_s0 + $0x2f0] sm:$0xff]  ;;  %v158_v45 = vld [vmem:[%s1786_s1 + $0x108] sm:$0xff] }
  0x10   :  { %291 = vmatpush1.msra.mxu0 %v133_v8  ;;  %1013 = vmatpush1.msra.mxu1 %v133_v8  ;;  %v17_v46 = vld [vmem:[%s1787_s0 + $0x30] sm:$0xff]  ;;  %v104_v47 = vld [vmem:[%s1787_s0 + $0x2e8] sm:$0xff]  ;;  %v157_v50 = vld [vmem:[%s1786_s1 + $0x100] sm:$0xff] }
  0x11   :  { %292 = vmatprep.subr.mxu0 %v1039_v0  ;;  %982 = vmatprep.subr.mxu1 %v1039_v0  ;;  %v21_v48 = vld [vmem:[%s1787_s0 + $0x50] sm:$0xff]  ;;  %v108_v49 = vld [vmem:[%s1787_s0 + $0x308] sm:$0xff]  ;;  %v107_v52 = vld [vmem:[%s1787_s0 + $0x300] sm:$0xff] }
  0x12   :  { %293 = vmatpush1.msra.mxu0 %v132_v9  ;;  %1014 = vmatpush1.msra.mxu1 %v132_v9  ;;  %v20_v51 = vld [vmem:[%s1787_s0 + $0x48] sm:$0xff]  ;;  %v111_v54 = vld [vmem:[%s1787_s0 + $0x320] sm:$0xff]  ;;  %v110_v56 = vld [vmem:[%s1787_s0 + $0x318] sm:$0xff] }
  0x13   :  { %294 = vmatprep.subr.mxu0 %v1039_v0  ;;  %983 = vmatprep.subr.mxu1 %v1039_v0  ;;  %v24_v53 = vld [vmem:[%s1787_s0 + $0x68] sm:$0xff]  ;;  %v23_v55 = vld [vmem:[%s1787_s0 + $0x60] sm:$0xff]  ;;  %v114_v58 = vld [vmem:[%s1787_s0 + $0x338] sm:$0xff] }
  0x14   :  { %295 = vmatpush1.msra.mxu0 %v131_v10  ;;  %1015 = vmatpush1.msra.mxu1 %v131_v10  ;;  %v27_v57 = vld [vmem:[%s1787_s0 + $0x80] sm:$0xff]  ;;  %v26_v59 = vld [vmem:[%s1787_s0 + $0x78] sm:$0xff]  ;;  %v113_v60 = vld [vmem:[%s1787_s0 + $0x330] sm:$0xff] }
  0x15   :  { %296 = vmatprep.subr.mxu0 %v1039_v0  ;;  %984 = vmatprep.subr.mxu1 %v1039_v0  ;;  %v30_v61 = vld [vmem:[%s1787_s0 + $0x98] sm:$0xff]  ;;  %v117_v62 = vld [vmem:[%s1787_s0 + $0x350] sm:$0xff]  ;;  %v120_v2 = vld [vmem:[%s1787_s0 + $0x368] sm:$0xff] }
  0x16   :  { %297 = vmatpush1.msra.mxu0 %v130_v11  ;;  %1016 = vmatpush1.msra.mxu1 %v130_v11  ;;  %v29_v63 = vld [vmem:[%s1787_s0 + $0x90] sm:$0xff]  ;;  %v32_v3 = vld [vmem:[%s1787_s0 + $0xa8] sm:$0xff]  ;;  %v119_v4 = vld [vmem:[%s1787_s0 + $0x360] sm:$0xff] }
  0x17   :  { %298 = vmatprep.subr.mxu0 %v1039_v0  ;;  %985 = vmatprep.subr.mxu1 %v1039_v0  ;;  %v33_v1 = vld [vmem:[%s1787_s0 + $0xb0] sm:$0xff]  ;;  %v36_v5 = vld [vmem:[%s1787_s0 + $0xc8] sm:$0xff]  ;;  %v123_v6 = vld [vmem:[%s1787_s0 + $0x380] sm:$0xff] }
  0x18   :  { %299 = vmatpush1.msra.mxu0 %v129_v12  ;;  %1017 = vmatpush1.msra.mxu1 %v129_v12  ;;  %v35_v7 = vld [vmem:[%s1787_s0 + $0xc0] sm:$0xff]  ;;  %v122_v8 = vld [vmem:[%s1787_s0 + $0x378] sm:$0xff]  ;;  %v13_v10 = vld [vmem:[%s1787_s0 + $0x10] sm:$0xff] }
  0x19   :  { %300 = vmatprep.subr.mxu0 %v1039_v0  ;;  %986 = vmatprep.subr.mxu1 %v1039_v0  ;;  %v39_v9 = vld [vmem:[%s1787_s0 + $0xe0] sm:$0xff]  ;;  %v38_v11 = vld [vmem:[%s1787_s0 + $0xd8] sm:$0xff]  ;;  %v16_v12 = vld [vmem:[%s1787_s0 + $0x28] sm:$0xff] }
  0x1a   :  { %301 = vmatpush1.msra.mxu0 %v128_v13  ;;  %1018 = vmatpush1.msra.mxu1 %v128_v13  ;;  %v42_v13 = vld [vmem:[%s1787_s0 + $0xf8] sm:$0xff] }
  0x1b   :  { %302 = vmatprep.subr.mxu0 %v1039_v0  ;;  %987 = vmatprep.subr.mxu1 %v1039_v0 }
  0x1c   :  { %303 = vmatpush1.msra.mxu0 %v127_v14  ;;  %1019 = vmatpush1.msra.mxu1 %v127_v14  ;;  %v19_v14 = vld [vmem:[%s1787_s0 + $0x40] sm:$0xff] }
  0x1d   :  { %304 = vmatprep.subr.mxu0 %v1039_v0  ;;  %988 = vmatprep.subr.mxu1 %v1039_v0 }
  0x1e   :  { %305 = vmatpush1.msra.mxu0 %v126_v15  ;;  %1020 = vmatpush1.msra.mxu1 %v126_v15  ;;  %v41_v15 = vld [vmem:[%s1787_s0 + $0xf0] sm:$0xff] }
  0x1f   :  { %306 = vmatprep.subr.mxu0 %v1039_v0  ;;  %989 = vmatprep.subr.mxu1 %v1039_v0 }
  0x20   :  { %307 = vmatpush1.msra.mxu0 %v125_v16  ;;  %1021 = vmatpush1.msra.mxu1 %v125_v16  ;;  %v22_v16 = vld [vmem:[%s1787_s0 + $0x58] sm:$0xff] }
  0x21   :  { %308 = vmatprep.subr.mxu0 %v1039_v0  ;;  %990 = vmatprep.subr.mxu1 %v1039_v0 }
  0x22   :  { %309 = vmatpush2.msra.mxu0 %v156_v17  ;;  %1022 = vmatpush2.msra.mxu1 %v156_v17  ;;  %v45_v17 = vld [vmem:[%s1787_s0 + $0x110] sm:$0xff] }
  0x23   :  { %310 = vmatprep.subr.mxu0 %v1039_v0  ;;  %991 = vmatprep.subr.mxu1 %v1039_v0 }
  0x24   :  { %311 = vmatpush2.msra.mxu0 %v155_v18  ;;  %1023 = vmatpush2.msra.mxu1 %v155_v18  ;;  %v25_v18 = vld [vmem:[%s1787_s0 + $0x70] sm:$0xff] }
  0x25   :  { %312 = vmatprep.subr.mxu0 %v1039_v0  ;;  %992 = vmatprep.subr.mxu1 %v1039_v0 }
  0x26   :  { %313 = vmatpush2.msra.mxu0 %v154_v19  ;;  %1024 = vmatpush2.msra.mxu1 %v154_v19  ;;  %v44_v19 = vld [vmem:[%s1787_s0 + $0x108] sm:$0xff] }
  0x27   :  { %314 = vmatprep.subr.mxu0 %v1039_v0  ;;  %993 = vmatprep.subr.mxu1 %v1039_v0 }
  0x28   :  { %315 = vmatpush2.msra.mxu0 %v153_v20  ;;  %1025 = vmatpush2.msra.mxu1 %v153_v20  ;;  %v28_v20 = vld [vmem:[%s1787_s0 + $0x88] sm:$0xff] }
  0x29   :  { %316 = vmatprep.subr.mxu0 %v1039_v0  ;;  %994 = vmatprep.subr.mxu1 %v1039_v0 }
  0x2a   :  { %317 = vmatpush2.msra.mxu0 %v152_v21  ;;  %1026 = vmatpush2.msra.mxu1 %v152_v21  ;;  %v48_v21 = vld [vmem:[%s1787_s0 + $0x128] sm:$0xff] }
  0x2b   :  { %318 = vmatprep.subr.mxu0 %v1039_v0  ;;  %995 = vmatprep.subr.mxu1 %v1039_v0 }
  0x2c   :  { %319 = vmatpush2.msra.mxu0 %v151_v22  ;;  %1027 = vmatpush2.msra.mxu1 %v151_v22  ;;  %v31_v22 = vld [vmem:[%s1787_s0 + $0xa0] sm:$0xff] }
  0x2d   :  { %320 = vmatprep.subr.mxu0 %v1039_v0  ;;  %996 = vmatprep.subr.mxu1 %v1039_v0 }
  0x2e   :  { %321 = vmatpush2.msra.mxu0 %v150_v23  ;;  %1028 = vmatpush2.msra.mxu1 %v150_v23  ;;  %v47_v23 = vld [vmem:[%s1787_s0 + $0x120] sm:$0xff] }
  0x2f   :  { %322 = vmatprep.subr.mxu0 %v1039_v0  ;;  %997 = vmatprep.subr.mxu1 %v1039_v0 }
  0x30   :  { %323 = vmatpush2.msra.mxu0 %v149_v24  ;;  %1029 = vmatpush2.msra.mxu1 %v149_v24  ;;  %v34_v24 = vld [vmem:[%s1787_s0 + $0xb8] sm:$0xff] }
  0x31   :  { %324 = vmatprep.subr.mxu0 %v1039_v0  ;;  %998 = vmatprep.subr.mxu1 %v1039_v0 }
  0x32   :  { %325 = vmatpush2.msra.mxu0 %v148_v25  ;;  %1030 = vmatpush2.msra.mxu1 %v148_v25  ;;  %v51_v25 = vld [vmem:[%s1787_s0 + $0x140] sm:$0xff] }
  0x33   :  { %326 = vmatprep.subr.mxu0 %v1039_v0  ;;  %999 = vmatprep.subr.mxu1 %v1039_v0 }
  0x34   :  { %327 = vmatpush2.msra.mxu0 %v147_v26  ;;  %1031 = vmatpush2.msra.mxu1 %v147_v26  ;;  %v37_v26 = vld [vmem:[%s1787_s0 + $0xd0] sm:$0xff] }
  0x35   :  { %328 = vmatprep.subr.mxu0 %v1039_v0  ;;  %1000 = vmatprep.subr.mxu1 %v1039_v0 }
  0x36   :  { %329 = vmatpush2.msra.mxu0 %v146_v27  ;;  %1032 = vmatpush2.msra.mxu1 %v146_v27  ;;  %v50_v27 = vld [vmem:[%s1787_s0 + $0x138] sm:$0xff] }
  0x37   :  { %330 = vmatprep.subr.mxu0 %v1039_v0  ;;  %1001 = vmatprep.subr.mxu1 %v1039_v0 }
  0x38   :  { %331 = vmatpush2.msra.mxu0 %v145_v28  ;;  %1033 = vmatpush2.msra.mxu1 %v145_v28  ;;  %v40_v28 = vld [vmem:[%s1787_s0 + $0xe8] sm:$0xff] }
  0x39   :  { %332 = vmatprep.subr.mxu0 %v1039_v0  ;;  %1002 = vmatprep.subr.mxu1 %v1039_v0 }
  0x3a   :  { %333 = vmatpush2.msra.mxu0 %v144_v29  ;;  %1034 = vmatpush2.msra.mxu1 %v144_v29  ;;  %v54_v29 = vld [vmem:[%s1787_s0 + $0x158] sm:$0xff] }
  0x3b   :  { %334 = vmatprep.subr.mxu0 %v1039_v0  ;;  %1003 = vmatprep.subr.mxu1 %v1039_v0 }
  0x3c   :  { %335 = vmatpush2.msra.mxu0 %v143_v30  ;;  %1035 = vmatpush2.msra.mxu1 %v143_v30  ;;  %v43_v30 = vld [vmem:[%s1787_s0 + $0x100] sm:$0xff] }
  0x3d   :  { %336 = vmatprep.subr.mxu0 %v1039_v0  ;;  %1004 = vmatprep.subr.mxu1 %v1039_v0 }
  0x3e   :  { %337 = vmatpush2.msra.mxu0 %v142_v31  ;;  %1036 = vmatpush2.msra.mxu1 %v142_v31  ;;  %v53_v31 = vld [vmem:[%s1787_s0 + $0x150] sm:$0xff] }
  0x3f   :  { %338 = vmatprep.subr.mxu0 %v1039_v0  ;;  %1005 = vmatprep.subr.mxu1 %v1039_v0  ;;  %v116_v0 = vld [vmem:[%s1787_s0 + $0x348] sm:$0xff] }
  0x40   :  { %339 = vmatpush2.msra.mxu0 %v141_v32  ;;  %1037 = vmatpush2.msra.mxu1 %v141_v32  ;;  %v46_v32 = vld [vmem:[%s1787_s0 + $0x118] sm:$0xff] }
  0x41   :  { %340 = vmatprep.mubr.f32.mxu0 %v12_v33  ;;  %485 = vmatprep.mubr.f32.mxu1 %v99_v34  ;;  %v57_v33 = vld [vmem:[%s1787_s0 + $0x170] sm:$0xff] }
  0x42   :  { %341 = vmatmul.mubr.f32.vlgmr.msra.gmra.mxu0 %v11_v35  ;;  %486 = vmatmul.mubr.f32.vlgmr.msra.gmra.mxu1 %v98_v36  ;;  %v49_v34 = vld [vmem:[%s1787_s0 + $0x130] sm:$0xff]  ;;  %v56_v35 = vld [vmem:[%s1787_s0 + $0x168] sm:$0xff] }
  0x43   :  { %909 = vmatprep.subr.mxu1 %v160_v37  ;;  %345 = vmatprep.mubr.f32.mxu0 %v15_v38  ;;  %v52_v36 = vld [vmem:[%s1787_s0 + $0x148] sm:$0xff]  ;;  %v55_v38 = vld [vmem:[%s1787_s0 + $0x160] sm:$0xff] }
  0x44   :  { %910 = vmatpush3.msra.mxu1 %v160_v37  ;;  %490 = vmatprep.mubr.f32.mxu1 %v102_v39  ;;  %v60_v37 = vld [vmem:[%s1787_s0 + $0x188] sm:$0xff]  ;;  %v59_v39 = vld [vmem:[%s1787_s0 + $0x180] sm:$0xff] }
  0x45   :  { %911 = vmatprep.subr.mxu1 %v159_v40 }
  0x46   :  { %346 = vmatmul.mubr.f32.gmra.mxu0 %v14_v41  ;;  %491 = vmatmul.mubr.f32.gmra.mxu1 %v101_v42  ;;  %v63_v41 = vld [vmem:[%s1787_s0 + $0x1a0] sm:$0xff]  ;;  %v61_v42 = vld [vmem:[%s1787_s0 + $0x190] sm:$0xff] }
  0x47   :  { %350 = vmatprep.mubr.f32.mxu0 %v18_v43  ;;  %495 = vmatprep.mubr.f32.mxu1 %v105_v44  ;;  %v62_v43 = vld [vmem:[%s1787_s0 + $0x198] sm:$0xff]  ;;  %v64_v44 = vld [vmem:[%s1787_s0 + $0x1a8] sm:$0xff] }
  0x48   :  { %912 = vmatpush3.msra.mxu1 %v159_v40  ;;  %v58_v40 = vld [vmem:[%s1787_s0 + $0x178] sm:$0xff] }
  0x49   :  { %913 = vmatprep.subr.mxu1 %v158_v45 }
  0x4a   :  { %351 = vmatmul.mubr.f32.gmra.mxu0 %v17_v46  ;;  %496 = vmatmul.mubr.f32.gmra.mxu1 %v104_v47  ;;  %v67_v46 = vld [vmem:[%s1787_s0 + $0x1c0] sm:$0xff]  ;;  %v65_v47 = vld [vmem:[%s1787_s0 + $0x1b0] sm:$0xff] }
  0x4b   :  { %355 = vmatprep.mubr.f32.mxu0 %v21_v48  ;;  %500 = vmatprep.mubr.f32.mxu1 %v108_v49  ;;  %v70_v48 = vld [vmem:[%s1787_s0 + $0x1d8] sm:$0xff]  ;;  %v69_v49 = vld [vmem:[%s1787_s0 + $0x1d0] sm:$0xff] }
  0x4c   :  { %914 = vmatpush3.msra.mxu1 %v158_v45  ;;  %v66_v45 = vld [vmem:[%s1787_s0 + $0x1b8] sm:$0xff] }
  0x4d   :  { %915 = vmatprep.subr.mxu1 %v157_v50 }
  0x4e   :  { %356 = vmatmul.mubr.f32.gmra.mxu0 %v20_v51  ;;  %501 = vmatmul.mubr.f32.gmra.mxu1 %v107_v52  ;;  %v68_v51 = vld [vmem:[%s1787_s0 + $0x1c8] sm:$0xff] }
  0x4f   :  { %360 = vmatprep.mubr.f32.mxu0 %v24_v53  ;;  %505 = vmatprep.mubr.f32.mxu1 %v111_v54  ;;  %v76_v52 = vld [vmem:[%s1787_s0 + $0x208] sm:$0xff]  ;;  %v79_v54 = vld [vmem:[%s1787_s0 + $0x220] sm:$0xff] }
  0x50   :  { %916 = vmatpush3.msra.mxu1 %v157_v50  ;;  %v73_v50 = vld [vmem:[%s1787_s0 + $0x1f0] sm:$0xff]  ;;  %v72_v53 = vld [vmem:[%s1787_s0 + $0x1e8] sm:$0xff] }
  0x52   :  { %361 = vmatmul.mubr.f32.gmra.mxu0 %v23_v55  ;;  %506 = vmatmul.mubr.f32.gmra.mxu1 %v110_v56  ;;  %v71_v55 = vld [vmem:[%s1787_s0 + $0x1e0] sm:$0xff]  ;;  %v82_v56 = vld [vmem:[%s1787_s0 + $0x238] sm:$0xff] }
  0x53   :  { %365 = vmatprep.mubr.f32.mxu0 %v27_v57  ;;  %510 = vmatprep.mubr.f32.mxu1 %v114_v58  ;;  %v75_v57 = vld [vmem:[%s1787_s0 + $0x200] sm:$0xff]  ;;  %v85_v58 = vld [vmem:[%s1787_s0 + $0x250] sm:$0xff] }
  0x56   :  { %366 = vmatmul.mubr.f32.gmra.mxu0 %v26_v59  ;;  %511 = vmatmul.mubr.f32.gmra.mxu1 %v113_v60  ;;  %v74_v59 = vld [vmem:[%s1787_s0 + $0x1f8] sm:$0xff]  ;;  %v88_v60 = vld [vmem:[%s1787_s0 + $0x268] sm:$0xff] }
  0x57   :  { %370 = vmatprep.mubr.f32.mxu0 %v30_v61  ;;  %515 = vmatprep.mubr.f32.mxu1 %v117_v62  ;;  %v78_v61 = vld [vmem:[%s1787_s0 + $0x218] sm:$0xff]  ;;  %v91_v62 = vld [vmem:[%s1787_s0 + $0x280] sm:$0xff] }
  0x5a   :  { %371 = vmatmul.mubr.f32.gmra.mxu0 %v29_v63  ;;  %516 = vmatmul.mubr.f32.gmra.mxu1 %v116_v0  ;;  %v77_v63 = vld [vmem:[%s1787_s0 + $0x210] sm:$0xff]  ;;  %v94_v0 = vld [vmem:[%s1787_s0 + $0x298] sm:$0xff] }
  0x5b   :  { %375 = vmatprep.mubr.f32.mxu0 %v33_v1  ;;  %520 = vmatprep.mubr.f32.mxu1 %v120_v2  ;;  %v81_v1 = vld [vmem:[%s1787_s0 + $0x230] sm:$0xff] }
  0x5c   :  { %v97_v2 = vld [vmem:[%s1787_s0 + $0x2b0] sm:$0xff] }
  0x5e   :  { %376 = vmatmul.mubr.f32.gmra.mxu0 %v32_v3  ;;  %521 = vmatmul.mubr.f32.gmra.mxu1 %v119_v4  ;;  %v80_v3 = vld [vmem:[%s1787_s0 + $0x228] sm:$0xff] }
  0x5f   :  { %380 = vmatprep.mubr.f32.mxu0 %v36_v5  ;;  %525 = vmatprep.mubr.f32.mxu1 %v123_v6  ;;  %v100_v4 = vld [vmem:[%s1787_s0 + $0x2c8] sm:$0xff]  ;;  %v103_v6 = vld [vmem:[%s1787_s0 + $0x2e0] sm:$0xff] }
  0x60   :  { %v84_v5 = vld [vmem:[%s1787_s0 + $0x248] sm:$0xff] }
  0x62   :  { %381 = vmatmul.mubr.f32.gmra.mxu0 %v35_v7  ;;  %526 = vmatmul.mubr.f32.gmra.mxu1 %v122_v8  ;;  %v83_v7 = vld [vmem:[%s1787_s0 + $0x240] sm:$0xff]  ;;  %v106_v8 = vld [vmem:[%s1787_s0 + $0x2f8] sm:$0xff] }
  0x63   :  { %385 = vmatprep.mubr.f32.mxu0 %v39_v9  ;;  %917 = vmatprep.mubr.msk.f32.mxu1 %vm161_vm0, %v13_v10  ;;  %v87_v9 = vld [vmem:[%s1787_s0 + $0x260] sm:$0xff]  ;;  %v109_v10 = vld [vmem:[%s1787_s0 + $0x310] sm:$0xff] }
  0x66   :  { %386 = vmatmul.mubr.f32.gmra.mxu0 %v38_v11  ;;  %918 = vmatmul.mubr.msk.f32.vlgmr.msra.gmra.mxu1 %vm161_vm0, %v16_v12  ;;  %v86_v11 = vld [vmem:[%s1787_s0 + $0x258] sm:$0xff]  ;;  %v112_v12 = vld [vmem:[%s1787_s0 + $0x328] sm:$0xff] }
  0x67   :  { %390 = vmatprep.mubr.f32.mxu0 %v42_v13  ;;  %920 = vmatprep.mubr.msk.f32.mxu1 %vm161_vm0, %v19_v14  ;;  %v90_v13 = vld [vmem:[%s1787_s0 + $0x278] sm:$0xff]  ;;  %v115_v14 = vld [vmem:[%s1787_s0 + $0x340] sm:$0xff] }
  0x6a   :  { %391 = vmatmul.mubr.f32.gmra.mxu0 %v41_v15  ;;  %921 = vmatmul.mubr.msk.f32.gmra.mxu1 %vm161_vm0, %v22_v16  ;;  %v89_v15 = vld [vmem:[%s1787_s0 + $0x270] sm:$0xff]  ;;  %v118_v16 = vld [vmem:[%s1787_s0 + $0x358] sm:$0xff] }
  0x6b   :  { %395 = vmatprep.mubr.f32.mxu0 %v45_v17  ;;  %923 = vmatprep.mubr.msk.f32.mxu1 %vm161_vm0, %v25_v18  ;;  %v93_v17 = vld [vmem:[%s1787_s0 + $0x290] sm:$0xff] }
  0x6c   :  { %v121_v18 = vld [vmem:[%s1787_s0 + $0x370] sm:$0xff] }
  0x6e   :  { %396 = vmatmul.mubr.f32.gmra.mxu0 %v44_v19  ;;  %924 = vmatmul.mubr.msk.f32.gmra.mxu1 %vm161_vm0, %v28_v20  ;;  %v92_v19 = vld [vmem:[%s1787_s0 + $0x288] sm:$0xff] }
  0x6f   :  { %400 = vmatprep.mubr.f32.mxu0 %v48_v21  ;;  %926 = vmatprep.mubr.msk.f32.mxu1 %vm161_vm0, %v31_v22  ;;  %v124_v20 = vld [vmem:[%s1787_s0 + $0x388] sm:$0xff]  ;;  %v95_v22 = vld [vmem:[%s1787_s0 + $0x2a0] sm:$0xff] }
  0x70   :  { %v96_v21 = vld [vmem:[%s1787_s0 + $0x2a8] sm:$0xff] }
  0x72   :  { %401 = vmatmul.mubr.f32.gmra.mxu0 %v47_v23  ;;  %927 = vmatmul.mubr.msk.f32.gmra.mxu1 %vm161_vm0, %v34_v24 }
  0x73   :  { %405 = vmatprep.mubr.f32.mxu0 %v51_v25  ;;  %929 = vmatprep.mubr.msk.f32.mxu1 %vm161_vm0, %v37_v26 }
  0x76   :  { %406 = vmatmul.mubr.f32.gmra.mxu0 %v50_v27  ;;  %930 = vmatmul.mubr.msk.f32.gmra.mxu1 %vm161_vm0, %v40_v28 }
  0x77   :  { %410 = vmatprep.mubr.f32.mxu0 %v54_v29  ;;  %932 = vmatprep.mubr.msk.f32.mxu1 %vm161_vm0, %v43_v30 }
  0x7a   :  { %411 = vmatmul.mubr.f32.gmra.mxu0 %v53_v31  ;;  %933 = vmatmul.mubr.msk.f32.gmra.mxu1 %vm161_vm0, %v46_v32 }
  0x7b   :  { %415 = vmatprep.mubr.f32.mxu0 %v57_v33  ;;  %935 = vmatprep.mubr.msk.f32.mxu1 %vm161_vm0, %v49_v34 }
  0x7e   :  { %416 = vmatmul.mubr.f32.gmra.mxu0 %v56_v35  ;;  %936 = vmatmul.mubr.msk.f32.gmra.mxu1 %vm161_vm0, %v52_v36 }
  0x7f   :  { %420 = vmatprep.mubr.f32.mxu0 %v60_v37  ;;  %938 = vmatprep.mubr.msk.f32.mxu1 %vm161_vm0, %v55_v38 }
  0x82   :  { %421 = vmatmul.mubr.f32.gmra.mxu0 %v59_v39  ;;  %939 = vmatmul.mubr.msk.f32.gmra.mxu1 %vm161_vm0, %v58_v40 }
  0x83   :  { %425 = vmatprep.mubr.f32.mxu0 %v63_v41  ;;  %941 = vmatprep.mubr.msk.f32.mxu1 %vm161_vm0, %v61_v42 }
  0x86   :  { %426 = vmatmul.mubr.f32.gmra.mxu0 %v62_v43  ;;  %942 = vmatmul.mubr.msk.f32.gmra.mxu1 %vm161_vm0, %v64_v44 }
  0x87   :  { %430 = vmatprep.mubr.f32.mxu0 %v66_v45  ;;  %944 = vmatprep.mubr.msk.f32.mxu1 %vm161_vm0, %v67_v46 }
  0x8a   :  { %431 = vmatmul.mubr.f32.gmra.mxu0 %v65_v47  ;;  %945 = vmatmul.mubr.msk.f32.gmra.mxu1 %vm161_vm0, %v70_v48 }
  0x8b   :  { %435 = vmatprep.mubr.f32.mxu0 %v69_v49  ;;  %947 = vmatprep.mubr.msk.f32.mxu1 %vm161_vm0, %v73_v50 }
  0x8e   :  { %436 = vmatmul.mubr.f32.gmra.mxu0 %v68_v51  ;;  %948 = vmatmul.mubr.msk.f32.gmra.mxu1 %vm161_vm0, %v76_v52 }
  0x8f   :  { %440 = vmatprep.mubr.f32.mxu0 %v72_v53  ;;  %950 = vmatprep.mubr.msk.f32.mxu1 %vm161_vm0, %v79_v54 }
  0x92   :  { %441 = vmatmul.mubr.f32.gmra.mxu0 %v71_v55  ;;  %951 = vmatmul.mubr.msk.f32.gmra.mxu1 %vm161_vm0, %v82_v56 }
  0x93   :  { %445 = vmatprep.mubr.f32.mxu0 %v75_v57  ;;  %953 = vmatprep.mubr.msk.f32.mxu1 %vm161_vm0, %v85_v58 }
  0x96   :  { %446 = vmatmul.mubr.f32.gmra.mxu0 %v74_v59  ;;  %954 = vmatmul.mubr.msk.f32.gmra.mxu1 %vm161_vm0, %v88_v60 }
  0x97   :  { %450 = vmatprep.mubr.f32.mxu0 %v78_v61  ;;  %956 = vmatprep.mubr.msk.f32.mxu1 %vm161_vm0, %v91_v62 }
  0x9a   :  { %451 = vmatmul.mubr.f32.gmra.mxu0 %v77_v63  ;;  %957 = vmatmul.mubr.msk.f32.gmra.mxu1 %vm161_vm0, %v94_v0 }
  0x9b   :  { %455 = vmatprep.mubr.f32.mxu0 %v81_v1  ;;  %959 = vmatprep.mubr.msk.f32.mxu1 %vm161_vm0, %v97_v2 }
  0x9e   :  { %456 = vmatmul.mubr.f32.gmra.mxu0 %v80_v3  ;;  %960 = vmatmul.mubr.msk.f32.gmra.mxu1 %vm161_vm0, %v100_v4 }
  0x9f   :  { %460 = vmatprep.mubr.f32.mxu0 %v84_v5  ;;  %962 = vmatprep.mubr.msk.f32.mxu1 %vm161_vm0, %v103_v6 }
  0xa2   :  { %461 = vmatmul.mubr.f32.gmra.mxu0 %v83_v7  ;;  %963 = vmatmul.mubr.msk.f32.gmra.mxu1 %vm161_vm0, %v106_v8 }
  0xa3   :  { %465 = vmatprep.mubr.f32.mxu0 %v87_v9  ;;  %965 = vmatprep.mubr.msk.f32.mxu1 %vm161_vm0, %v109_v10 }
  0xa6   :  { %466 = vmatmul.mubr.f32.gmra.mxu0 %v86_v11  ;;  %966 = vmatmul.mubr.msk.f32.gmra.mxu1 %vm161_vm0, %v112_v12 }
  0xa7   :  { %470 = vmatprep.mubr.f32.mxu0 %v90_v13  ;;  %968 = vmatprep.mubr.msk.f32.mxu1 %vm161_vm0, %v115_v14 }
  0xaa   :  { %471 = vmatmul.mubr.f32.gmra.mxu0 %v89_v15  ;;  %969 = vmatmul.mubr.msk.f32.gmra.mxu1 %vm161_vm0, %v118_v16 }
  0xab   :  { %475 = vmatprep.mubr.f32.mxu0 %v93_v17  ;;  %971 = vmatprep.mubr.msk.f32.mxu1 %vm161_vm0, %v121_v18 }
  0xae   :  { %476 = vmatmul.mubr.f32.gmra.mxu0 %v92_v19  ;;  %972 = vmatmul.mubr.msk.f32.gmra.mxu1 %vm161_vm0, %v124_v20 }
  0xaf   :  { %480 = vmatprep.mubr.f32.mxu0 %v96_v21 }
  0xb2   :  { %481 = vmatmul.mubr.f32.gmra.mxu0 %v95_v22 }
 0x102   :  { %v342_v23 = vpop.f32.mrf.mxu0  ;;  %v1607_v24 = vpop.f32.mrf.mxu1 }
 0x104   :  { %v344_v25 = vpop.f32.mrf.mxu0  ;;  %v489_v26 = vpop.f32.mrf.mxu1 }
 0x106   :  { %v347_v27 = vpop.f32.mrf.mxu0  ;;  %v1609_v28 = vpop.f32.mrf.mxu1 }
 0x108   :  { %v349_v29 = vpop.f32.mrf.mxu0  ;;  %v494_v30 = vpop.f32.mrf.mxu1 }
 0x10a   :  { %v352_v31 = vpop.f32.mrf.mxu0  ;;  %v1611_v32 = vpop.f32.mrf.mxu1 }
 0x10c   :  { %v354_v33 = vpop.f32.mrf.mxu0  ;;  %v499_v34 = vpop.f32.mrf.mxu1 }
 0x10e   :  { %v357_v35 = vpop.f32.mrf.mxu0  ;;  %v1613_v36 = vpop.f32.mrf.mxu1 }
 0x110   :  { %v359_v37 = vpop.f32.mrf.mxu0  ;;  %v504_v38 = vpop.f32.mrf.mxu1 }
 0x112   :  { %v362_v39 = vpop.f32.mrf.mxu0  ;;  %v1615_v40 = vpop.f32.mrf.mxu1 }
 0x114   :  { %v364_v41 = vpop.f32.mrf.mxu0  ;;  %v509_v42 = vpop.f32.mrf.mxu1 }
 0x116   :  { %v367_v43 = vpop.f32.mrf.mxu0  ;;  %v1617_v44 = vpop.f32.mrf.mxu1 }
 0x118   :  { %v369_v45 = vpop.f32.mrf.mxu0  ;;  %v514_v46 = vpop.f32.mrf.mxu1 }
 0x11a   :  { %v372_v47 = vpop.f32.mrf.mxu0  ;;  %v1619_v48 = vpop.f32.mrf.mxu1 }
 0x11c   :  { %v374_v49 = vpop.f32.mrf.mxu0  ;;  %v519_v50 = vpop.f32.mrf.mxu1 }
 0x11e   :  { %v377_v51 = vpop.f32.mrf.mxu0  ;;  %v1621_v52 = vpop.f32.mrf.mxu1 }
 0x120   :  { %v379_v53 = vpop.f32.mrf.mxu0  ;;  %v524_v54 = vpop.f32.mrf.mxu1 }
 0x122   :  { %v382_v55 = vpop.f32.mrf.mxu0  ;;  %v1623_v56 = vpop.f32.mrf.mxu1 }
 0x124   :  { %v384_v57 = vpop.f32.mrf.mxu0  ;;  %v529_v58 = vpop.f32.mrf.mxu1 }
 0x126   :  { %v387_v59 = vpop.f32.mrf.mxu0  ;;  %v919_v60 = vpop.f32.mrf.mxu1 }
 0x127   :  { %v603_v61 = vadd.f32 %v919_v60, %v347_v27 }
 0x128   :  { %v389_v62 = vpop.f32.mrf.mxu0  ;;  %v597_v63 = vpop.f32.mrf.mxu1 }
 0x129   :  { %788 = vst.msk [vmem:[%s1788_s2 + $0x8] sm:$0xff] %vm786_vm1, %v603_v61  ;;  %v598_v0 = vadd.f32 %v597_v63, %v342_v23 }
 0x12a   :  { %v392_v1 = vpop.f32.mrf.mxu0  ;;  %v922_v2 = vpop.f32.mrf.mxu1 }
 0x12b   :  { %787 = vst.msk [vmem:[%s1788_s2] sm:$0xff] %vm786_vm1, %v598_v0  ;;  %v613_v3 = vadd.f32 %v922_v2, %v357_v35 }
 0x12c   :  { %v394_v4 = vpop.f32.mrf.mxu0  ;;  %v607_v5 = vpop.f32.mrf.mxu1 }
 0x12d   :  { %790 = vst.msk [vmem:[%s1788_s2 + $0x18] sm:$0xff] %vm786_vm1, %v613_v3  ;;  %v608_v6 = vadd.f32 %v607_v5, %v352_v31 }
 0x12e   :  { %v397_v7 = vpop.f32.mrf.mxu0  ;;  %v925_v8 = vpop.f32.mrf.mxu1 }
 0x12f   :  { %789 = vst.msk [vmem:[%s1788_s2 + $0x10] sm:$0xff] %vm786_vm1, %v608_v6  ;;  %v623_v9 = vadd.f32 %v925_v8, %v367_v43 }
 0x130   :  { %v399_v10 = vpop.f32.mrf.mxu0  ;;  %v617_v11 = vpop.f32.mrf.mxu1 }
 0x131   :  { %792 = vst.msk [vmem:[%s1788_s2 + $0x28] sm:$0xff] %vm786_vm1, %v623_v9  ;;  %v618_v12 = vadd.f32 %v617_v11, %v362_v39 }
 0x132   :  { %v402_v13 = vpop.f32.mrf.mxu0  ;;  %v928_v14 = vpop.f32.mrf.mxu1 }
 0x133   :  { %791 = vst.msk [vmem:[%s1788_s2 + $0x20] sm:$0xff] %vm786_vm1, %v618_v12  ;;  %v633_v15 = vadd.f32 %v928_v14, %v377_v51 }
 0x134   :  { %v404_v16 = vpop.f32.mrf.mxu0  ;;  %v627_v17 = vpop.f32.mrf.mxu1 }
 0x135   :  { %794 = vst.msk [vmem:[%s1788_s2 + $0x38] sm:$0xff] %vm786_vm1, %v633_v15  ;;  %v628_v18 = vadd.f32 %v627_v17, %v372_v47 }
 0x136   :  { %v407_v19 = vpop.f32.mrf.mxu0  ;;  %v931_v20 = vpop.f32.mrf.mxu1 }
 0x137   :  { %793 = vst.msk [vmem:[%s1788_s2 + $0x30] sm:$0xff] %vm786_vm1, %v628_v18  ;;  %v643_v21 = vadd.f32 %v931_v20, %v387_v59 }
 0x138   :  { %v409_v22 = vpop.f32.mrf.mxu0  ;;  %v637_v23 = vpop.f32.mrf.mxu1 }
 0x139   :  { %796 = vst.msk [vmem:[%s1788_s2 + $0x48] sm:$0xff] %vm786_vm1, %v643_v21  ;;  %v638_v25 = vadd.f32 %v637_v23, %v382_v55 }
 0x13a   :  { %v412_v26 = vpop.f32.mrf.mxu0  ;;  %v934_v27 = vpop.f32.mrf.mxu1 }
 0x13b   :  { %795 = vst.msk [vmem:[%s1788_s2 + $0x40] sm:$0xff] %vm786_vm1, %v638_v25  ;;  %v653_v29 = vadd.f32 %v934_v27, %v397_v7 }
 0x13c   :  { %v414_v30 = vpop.f32.mrf.mxu0  ;;  %v647_v31 = vpop.f32.mrf.mxu1 }
 0x13d   :  { %798 = vst.msk [vmem:[%s1788_s2 + $0x58] sm:$0xff] %vm786_vm1, %v653_v29  ;;  %v648_v33 = vadd.f32 %v647_v31, %v392_v1 }
 0x13e   :  { %v417_v34 = vpop.f32.mrf.mxu0  ;;  %v937_v35 = vpop.f32.mrf.mxu1 }
 0x13f   :  { %797 = vst.msk [vmem:[%s1788_s2 + $0x50] sm:$0xff] %vm786_vm1, %v648_v33  ;;  %v663_v37 = vadd.f32 %v937_v35, %v407_v19 }
 0x140   :  { %v419_v38 = vpop.f32.mrf.mxu0  ;;  %v657_v39 = vpop.f32.mrf.mxu1 }
 0x141   :  { %800 = vst.msk [vmem:[%s1788_s2 + $0x68] sm:$0xff] %vm786_vm1, %v663_v37  ;;  %v658_v41 = vadd.f32 %v657_v39, %v402_v13 }
 0x142   :  { %v422_v42 = vpop.f32.mrf.mxu0  ;;  %v940_v43 = vpop.f32.mrf.mxu1 }
 0x143   :  { %799 = vst.msk [vmem:[%s1788_s2 + $0x60] sm:$0xff] %vm786_vm1, %v658_v41  ;;  %v673_v45 = vadd.f32 %v940_v43, %v417_v34 }
 0x144   :  { %v424_v46 = vpop.f32.mrf.mxu0  ;;  %v667_v47 = vpop.f32.mrf.mxu1 }
 0x145   :  { %802 = vst.msk [vmem:[%s1788_s2 + $0x78] sm:$0xff] %vm786_vm1, %v673_v45  ;;  %v668_v49 = vadd.f32 %v667_v47, %v412_v26 }
 0x146   :  { %v427_v50 = vpop.f32.mrf.mxu0  ;;  %v943_v51 = vpop.f32.mrf.mxu1 }
 0x147   :  { %801 = vst.msk [vmem:[%s1788_s2 + $0x70] sm:$0xff] %vm786_vm1, %v668_v49  ;;  %v683_v53 = vadd.f32 %v943_v51, %v427_v50 }
 0x148   :  { %v429_v54 = vpop.f32.mrf.mxu0  ;;  %v677_v55 = vpop.f32.mrf.mxu1 }
 0x149   :  { %804 = vst.msk [vmem:[%s1788_s2 + $0x88] sm:$0xff] %vm786_vm1, %v683_v53  ;;  %v678_v57 = vadd.f32 %v677_v55, %v422_v42 }
 0x14a   :  { %v432_v58 = vpop.f32.mrf.mxu0  ;;  %v946_v59 = vpop.f32.mrf.mxu1 }
 0x14b   :  { %803 = vst.msk [vmem:[%s1788_s2 + $0x80] sm:$0xff] %vm786_vm1, %v678_v57 }
 0x14c   :  { %v434_v60 = vpop.f32.mrf.mxu0  ;;  %v687_v61 = vpop.f32.mrf.mxu1 }
 0x14d   :  { %v688_v62 = vadd.f32 %v687_v61, %v432_v58 }
 0x14e   :  { %v437_v63 = vpop.f32.mrf.mxu0  ;;  %v949_v0 = vpop.f32.mrf.mxu1 }
 0x14f   :  { %805 = vst.msk [vmem:[%s1788_s2 + $0x90] sm:$0xff] %vm786_vm1, %v688_v62  ;;  %v693_v1 = vadd.f32 %v946_v59, %v437_v63 }
 0x150   :  { %v439_v2 = vpop.f32.mrf.mxu0  ;;  %v697_v3 = vpop.f32.mrf.mxu1 }
 0x151   :  { %806 = vst.msk [vmem:[%s1788_s2 + $0x98] sm:$0xff] %vm786_vm1, %v693_v1 }
 0x152   :  { %v442_v4 = vpop.f32.mrf.mxu0  ;;  %v952_v5 = vpop.f32.mrf.mxu1 }
 0x153   :  { %v698_v6 = vadd.f32 %v697_v3, %v442_v4 }
 0x154   :  { %v444_v7 = vpop.f32.mrf.mxu0  ;;  %v707_v8 = vpop.f32.mrf.mxu1 }
 0x155   :  { %807 = vst.msk [vmem:[%s1788_s2 + $0xa0] sm:$0xff] %vm786_vm1, %v698_v6 }
 0x156   :  { %v447_v9 = vpop.f32.mrf.mxu0  ;;  %v955_v10 = vpop.f32.mrf.mxu1 }
 0x157   :  { %v703_v11 = vadd.f32 %v949_v0, %v447_v9 }
 0x158   :  { %v449_v12 = vpop.f32.mrf.mxu0  ;;  %v717_v13 = vpop.f32.mrf.mxu1 }
 0x159   :  { %808 = vst.msk [vmem:[%s1788_s2 + $0xa8] sm:$0xff] %vm786_vm1, %v703_v11 }
 0x15a   :  { %v452_v14 = vpop.f32.mrf.mxu0  ;;  %v958_v15 = vpop.f32.mrf.mxu1 }
 0x15b   :  { %v708_v16 = vadd.f32 %v707_v8, %v452_v14 }
 0x15c   :  { %v454_v17 = vpop.f32.mrf.mxu0  ;;  %v727_v18 = vpop.f32.mrf.mxu1 }
 0x15d   :  { %809 = vst.msk [vmem:[%s1788_s2 + $0xb0] sm:$0xff] %vm786_vm1, %v708_v16 }
 0x15e   :  { %v457_v19 = vpop.f32.mrf.mxu0  ;;  %v961_v20 = vpop.f32.mrf.mxu1 }
 0x15f   :  { %v713_v21 = vadd.f32 %v952_v5, %v457_v19  ;;  %v743_v22 = vadd.f32 %v961_v20, %v1607_v24 }
 0x160   :  { %v459_v23 = vpop.f32.mrf.mxu0  ;;  %v737_v25 = vpop.f32.mrf.mxu1 }
 0x161   :  { %810 = vst.msk [vmem:[%s1788_s2 + $0xb8] sm:$0xff] %vm786_vm1, %v713_v21  ;;  %816 = vst.msk [vmem:[%s1788_s2 + $0xe8] sm:$0xff] %vm786_vm1, %v743_v22 }
 0x162   :  { %v462_v26 = vpop.f32.mrf.mxu0  ;;  %v964_v27 = vpop.f32.mrf.mxu1 }
 0x163   :  { %v718_v29 = vadd.f32 %v717_v13, %v462_v26  ;;  %v753_v30 = vadd.f32 %v964_v27, %v1611_v32 }
 0x164   :  { %v464_v31 = vpop.f32.mrf.mxu0  ;;  %v747_v33 = vpop.f32.mrf.mxu1 }
 0x165   :  { %811 = vst.msk [vmem:[%s1788_s2 + $0xc0] sm:$0xff] %vm786_vm1, %v718_v29  ;;  %818 = vst.msk [vmem:[%s1788_s2 + $0xf8] sm:$0xff] %vm786_vm1, %v753_v30  ;;  %v748_v24 = vadd.f32 %v747_v33, %v1609_v28 }
 0x166   :  { %v467_v34 = vpop.f32.mrf.mxu0  ;;  %v967_v35 = vpop.f32.mrf.mxu1 }
 0x167   :  { %817 = vst.msk [vmem:[%s1788_s2 + $0xf0] sm:$0xff] %vm786_vm1, %v748_v24  ;;  %v723_v32 = vadd.f32 %v955_v10, %v467_v34  ;;  %v763_v37 = vadd.f32 %v967_v35, %v1615_v40 }
 0x168   :  { %v469_v38 = vpop.f32.mrf.mxu0  ;;  %v757_v39 = vpop.f32.mrf.mxu1 }
 0x169   :  { %812 = vst.msk [vmem:[%s1788_s2 + $0xc8] sm:$0xff] %vm786_vm1, %v723_v32  ;;  %820 = vst.msk [vmem:[%s1788_s2 + $0x108] sm:$0xff] %vm786_vm1, %v763_v37  ;;  %v758_v28 = vadd.f32 %v757_v39, %v1613_v36 }
 0x16a   :  { %v472_v41 = vpop.f32.mrf.mxu0  ;;  %v970_v42 = vpop.f32.mrf.mxu1 }
 0x16b   :  { %819 = vst.msk [vmem:[%s1788_s2 + $0x100] sm:$0xff] %vm786_vm1, %v758_v28  ;;  %v728_v40 = vadd.f32 %v727_v18, %v472_v41  ;;  %v773_v43 = vadd.f32 %v970_v42, %v1619_v48 }
 0x16c   :  { %v474_v45 = vpop.f32.mrf.mxu0  ;;  %v767_v46 = vpop.f32.mrf.mxu1 }
 0x16d   :  { %813 = vst.msk [vmem:[%s1788_s2 + $0xd0] sm:$0xff] %vm786_vm1, %v728_v40  ;;  %822 = vst.msk [vmem:[%s1788_s2 + $0x118] sm:$0xff] %vm786_vm1, %v773_v43  ;;  %v768_v36 = vadd.f32 %v767_v46, %v1617_v44 }
 0x16e   :  { %v477_v47 = vpop.f32.mrf.mxu0  ;;  %v973_v49 = vpop.f32.mrf.mxu1 }
 0x16f   :  { %821 = vst.msk [vmem:[%s1788_s2 + $0x110] sm:$0xff] %vm786_vm1, %v768_v36  ;;  %v733_v48 = vadd.f32 %v958_v15, %v477_v47  ;;  %v783_v50 = vadd.f32 %v973_v49, %v1623_v56 }
 0x170   :  { %v479_v51 = vpop.f32.mrf.mxu0  ;;  %v777_v53 = vpop.f32.mrf.mxu1 }
 0x171   :  { %814 = vst.msk [vmem:[%s1788_s2 + $0xd8] sm:$0xff] %vm786_vm1, %v733_v48  ;;  %824 = vst.msk [vmem:[%s1788_s2 + $0x128] sm:$0xff] %vm786_vm1, %v783_v50  ;;  %v778_v44 = vadd.f32 %v777_v53, %v1621_v52 }
 0x172   :  { %v482_v54 = vpop.f32.mrf.mxu0 }
 0x173   :  { %823 = vst.msk [vmem:[%s1788_s2 + $0x120] sm:$0xff] %vm786_vm1, %v778_v44  ;;  %v738_v56 = vadd.f32 %v737_v25, %v482_v54 }
 0x174   :  { %v484_v55 = vpop.f32.mrf.mxu0 }
 0x175   :  { %815 = vst.msk [vmem:[%s1788_s2 + $0xe0] sm:$0xff] %vm786_vm1, %v738_v56 }

</bundles_post_ra>
